<compile_context>
chip_gen: v7x
topology: tpu7x:2x2x1
jax: 0.10.0
libtpu: 0.0.40
codegen_flags: <defaults>
</compile_context>

<pallas_src>
import functools

import jax
import jax.numpy as jnp
from jax.experimental import pallas as pl
from jax.experimental.pallas import tpu as pltpu

_EPS = 1e-5
_LANE = 128


def _round_up(v, m):
    return (v + m - 1) // m * m


def choose_tile_n(n, requested=512):
    """Largest 128-aligned node tile <= requested that keeps >= 2 row tiles (megacore)."""
    n128 = _round_up(n, _LANE)
    half = _round_up(-(-n128 // 2), _LANE)
    return max(_LANE, min(requested, half))


def prepare_adjacency(adj_hat, tile_n):
    """Pad A_hat to (n_pad, n_pad) and cast to bf16 ONCE (reused across layers/steps)."""
    n = adj_hat.shape[0]
    n_pad = _round_up(n, tile_n)
    adj_p = jnp.zeros((n_pad, n_pad), jnp.float32).at[:n, :n].set(adj_hat)
    return adj_p.astype(jnp.bfloat16)


def _deepgcn_kernel(adj_ref, h_ref, xi_ref, w_ref, b_ref, o_ref):
    k = pl.program_id(1)

    # Partial neighborhood aggregation: A_hat[i, k] @ h[k]   (bf16 MXU, f32 accumulation)
    part = jnp.dot(adj_ref[...], h_ref[...], preferred_element_type=jnp.float32)

    # Accumulate directly into the resident output block (index (i, 0) is constant across k).
    @pl.when(k == 0)
    def _():
        o_ref[...] = part

    @pl.when(k != 0)
    def _():
        o_ref[...] += part

    @pl.when(k == pl.num_programs(1) - 1)
    def _():
        # Feature transform (bf16 MXU, f32 acc) + bias + residual, one lane-dense f32 store.
        agg = o_ref[...].astype(jnp.bfloat16)
        out = jnp.dot(agg, w_ref[...], preferred_element_type=jnp.float32)
        o_ref[...] = out + b_ref[...] + xi_ref[...]


@functools.partial(jax.jit, static_argnames=("tile_n",))
def deepgcn_layer(x, adj_bf16, weight, bias, gamma, beta, *, tile_n=512):
    """DeepGCN 'res+' forward: x + GCNConv(relu(BN(x))).

    x: (N, F) f32; adj_bf16: PRE-PADDED (N_pad, N_pad) bf16 normalized adjacency
    (from prepare_adjacency); weight: (F, F_out); bias: (1, F_out); gamma/beta: (1, F).
    """
    n, f = x.shape
    f_out = weight.shape[1]
    assert f == f_out, "res+ residual requires in_feat == out_feat"
    n_pad = adj_bf16.shape[0]
    assert n_pad % tile_n == 0 and n_pad == _round_up(n, tile_n), \
        "adjacency must be pre-padded with prepare_adjacency(adj_hat, tile_n)"

    # ---- BatchNorm stats over the full node axis, folded into scale/shift; ReLU;
    #      cast to bf16 once (hoisted out of the k-tiled kernel). ----
    mean = jnp.mean(x, axis=0, keepdims=True)
    var = jnp.mean(jnp.square(x - mean), axis=0, keepdims=True)
    scale = jax.lax.rsqrt(var + _EPS) * gamma
    shift = beta - mean * scale
    h = jnp.maximum(x * scale + shift, 0.0).astype(jnp.bfloat16)

    # ---- Pad features to the 128-lane width (zero padding is exact; sliced off at the end).
    fp = _round_up(max(f, _LANE), _LANE)
    xp = jnp.zeros((n_pad, fp), jnp.float32).at[:n, :f].set(x)          # residual stream
    hp = jnp.zeros((n_pad, fp), jnp.bfloat16).at[:n, :f].set(h)         # bf16 k-stream
    w_p = jnp.zeros((fp, fp), jnp.bfloat16).at[:f, :f_out].set(weight.astype(jnp.bfloat16))
    b_p = jnp.zeros((1, fp), jnp.float32).at[:, :f_out].set(bias)

    grid = (n_pad // tile_n, n_pad // tile_n)   # (output row tiles, k reduction tiles)
    const = lambda i, k: (0, 0)                 # VMEM-resident parameters

    out_p = pl.pallas_call(
        _deepgcn_kernel,
        out_shape=jax.ShapeDtypeStruct((n_pad, fp), jnp.float32),
        grid_spec=pltpu.PrefetchScalarGridSpec(
            num_scalar_prefetch=0,
            grid=grid,
            in_specs=[
                pl.BlockSpec((tile_n, tile_n), lambda i, k: (i, k)),  # A_hat tile (bf16)
                pl.BlockSpec((tile_n, fp), lambda i, k: (k, 0)),      # h = relu(BN(x)) (bf16)
                pl.BlockSpec((tile_n, fp), lambda i, k: (i, 0)),      # x rows -> residual (f32)
                pl.BlockSpec((fp, fp), const),                        # weight (bf16)
                pl.BlockSpec((1, fp), const),                         # bias (f32)
            ],
            out_specs=pl.BlockSpec((tile_n, fp), lambda i, k: (i, 0)),
        ),
        compiler_params=pltpu.CompilerParams(
            dimension_semantics=("parallel", "arbitrary"),
            vmem_limit_bytes=32 * 1024 * 1024,   # headroom for tile_n up to ~1024
        ),
    )(adj_bf16, hp, xp, w_p, b_p)

    return out_p[:n, :f_out]


def build_normalized_adjacency(edge_index, num_nodes):
    """Dense A_hat = D^-1/2 (A + I) D^-1/2 from edge_index [2, E] (plain-JAX glue)."""
    src, dst = edge_index[0], edge_index[1]
    adj = jnp.zeros((num_nodes, num_nodes), dtype=jnp.float32)
    adj = adj.at[src, dst].set(1.0)
    adj = adj.at[dst, src].set(1.0)                       # undirected
    adj = adj + jnp.eye(num_nodes, dtype=jnp.float32)     # self loops
    deg = jnp.sum(adj, axis=1)
    d_inv_sqrt = jnp.where(deg > 0, 1.0 / jnp.sqrt(deg), 0.0)
    return adj * d_inv_sqrt[:, None] * d_inv_sqrt[None, :]


def reference_forward(x, adj_hat, weight, bias, gamma, beta):
    mean = jnp.mean(x, axis=0, keepdims=True)
    var = jnp.mean((x - mean) ** 2, axis=0, keepdims=True)
    h = (x - mean) * jax.lax.rsqrt(var + _EPS) * gamma + beta
    h = jnp.maximum(h, 0.0)
    # Mirror the kernel's bf16 aggregation + bf16 epilogue so the check stays tight.
    agg = jnp.dot(adj_hat.astype(jnp.bfloat16).astype(jnp.float32),
                  h.astype(jnp.bfloat16).astype(jnp.float32),
                  precision=jax.lax.Precision.HIGHEST)
    conv = jnp.dot(agg.astype(jnp.bfloat16).astype(jnp.float32),
                   weight.astype(jnp.bfloat16).astype(jnp.float32),
                   precision=jax.lax.Precision.HIGHEST) + bias
    return x + conv


if __name__ == "__main__":
    key = jax.random.PRNGKey(0)
    num_nodes, in_feat, out_feat = 256, 64, 64   # res+ residual requires in_feat == out_feat
    num_edges = 512

    k_x, k_e, k_w = jax.random.split(key, 3)
    x = jax.random.normal(k_x, (num_nodes, in_feat), dtype=jnp.float32)
    edge_index = jax.random.randint(k_e, (2, num_edges), 0, num_nodes, dtype=jnp.int32)
    adj_hat = build_normalized_adjacency(edge_index, num_nodes)

    # Deterministic parameter init (conv linear weight/bias, BatchNorm1d affine gamma/beta).
    weight = jax.random.normal(k_w, (in_feat, out_feat), dtype=jnp.float32) * 0.1
    bias = jnp.zeros((1, out_feat), dtype=jnp.float32)
    gamma = jnp.ones((1, in_feat), dtype=jnp.float32)
    beta = jnp.zeros((1, in_feat), dtype=jnp.float32)

    # Tile choice + one-time adjacency pad/bf16 cast (reused across layers/steps).
    tile_n = choose_tile_n(num_nodes, requested=512)
    adj_pad_bf16 = jax.block_until_ready(prepare_adjacency(adj_hat, tile_n))

    out = jax.block_until_ready(
        deepgcn_layer(x, adj_pad_bf16, weight, bias, gamma, beta, tile_n=tile_n))
    ref = reference_forward(x, adj_hat, weight, bias, gamma, beta)

    assert out.shape == (num_nodes, out_feat)
    max_err = jnp.max(jnp.abs(out - ref))
    assert jnp.allclose(out, ref, atol=1e-2, rtol=1e-2), f"mismatch vs reference: {max_err}"
    print("KERNEL_OK")
</pallas_src>

<mosaic_0001>
module attributes {stable_mosaic.version = 11 : i64} {
  func.func @_deepgcn_kernel(%arg0: i32, %arg1: i32, %arg2: memref<128x128xbf16, #tpu.memory_space<vmem>>, %arg3: memref<128x128xbf16, #tpu.memory_space<vmem>>, %arg4: memref<128x128xf32, #tpu.memory_space<vmem>>, %arg5: memref<128x128xbf16, #tpu.memory_space<vmem>>, %arg6: memref<1x128xf32, #tpu.memory_space<vmem>>, %arg7: memref<128x128xf32, #tpu.memory_space<vmem>>) attributes {dimension_semantics = [#tpu.dimension_semantics<parallel>, #tpu.dimension_semantics<arbitrary>], iteration_bounds = array<i64: 2, 2>, scalar_prefetch = 0 : i64, scratch_operands = 0 : i64, tpu.core_type = #tpu.core_type<tc>, window_params = [{transform_indices = @transform_0, window_bounds = array<i64: 128, 128>}, {transform_indices = @transform_1, window_bounds = array<i64: 128, 128>}, {transform_indices = @transform_2, window_bounds = array<i64: 128, 128>}, {pipeline_mode = #tpu.pipeline_mode<synchronous>, transform_indices = @transform_3, window_bounds = array<i64: 128, 128>}, {pipeline_mode = #tpu.pipeline_mode<synchronous>, transform_indices = @transform_4, window_bounds = array<i64: 1, 128>}, {transform_indices = @transform_5, window_bounds = array<i64: 128, 128>}]} {
    %c0 = arith.constant 0 : index
    %c0_0 = arith.constant 0 : index
    %0 = vector.load %arg2[%c0, %c0_0] : memref<128x128xbf16, #tpu.memory_space<vmem>>, vector<128x128xbf16>
    %c0_1 = arith.constant 0 : index
    %c0_2 = arith.constant 0 : index
    %1 = vector.load %arg3[%c0_1, %c0_2] : memref<128x128xbf16, #tpu.memory_space<vmem>>, vector<128x128xbf16>
    %cst = arith.constant dense<0.000000e+00> : vector<128x128xf32>
    %2 = tpu.matmul %0, %1, %cst {dimension_numbers = #tpu.dot_dimension_numbers<[1], [0], [0], [1], [0, 0, 1, 1], [], []>} : vector<128x128xbf16>, vector<128x128xbf16>, vector<128x128xf32> -> vector<128x128xf32>
    %c0_i32 = arith.constant 0 : i32
    %3 = arith.cmpi eq, %arg1, %c0_i32 : i32
    %4 = arith.extui %3 : i1 to i32
    %c0_i32_3 = arith.constant 0 : i32
    %5 = arith.cmpi ne, %4, %c0_i32_3 : i32
    scf.if %5 {
      %c0_7 = arith.constant 0 : index
      %c0_8 = arith.constant 0 : index
      %12 = vector.load %arg7[%c0_7, %c0_8] : memref<128x128xf32, #tpu.memory_space<vmem>>, vector<128x128xf32>
      tpu.vector_store %arg7[%c0_7, %c0_8], %2 {strides = array<i32>} : memref<128x128xf32, #tpu.memory_space<vmem>>, vector<128x128xf32>,
    } else {
    }
    %c0_i32_4 = arith.constant 0 : i32
    %6 = arith.cmpi ne, %arg1, %c0_i32_4 : i32
    %7 = arith.extui %6 : i1 to i32
    %c0_i32_5 = arith.constant 0 : i32
    %8 = arith.cmpi ne, %7, %c0_i32_5 : i32
    scf.if %8 {
      %c0_7 = arith.constant 0 : index
      %c0_8 = arith.constant 0 : index
      %12 = vector.load %arg7[%c0_7, %c0_8] : memref<128x128xf32, #tpu.memory_space<vmem>>, vector<128x128xf32>
      %13 = arith.addf %12, %2 : vector<128x128xf32>
      %c0_9 = arith.constant 0 : index
      %c0_10 = arith.constant 0 : index
      %14 = vector.load %arg7[%c0_9, %c0_10] : memref<128x128xf32, #tpu.memory_space<vmem>>, vector<128x128xf32>
      tpu.vector_store %arg7[%c0_9, %c0_10], %13 {strides = array<i32>} : memref<128x128xf32, #tpu.memory_space<vmem>>, vector<128x128xf32>,
    } else {
    }
    %c1_i32 = arith.constant 1 : i32
    %9 = arith.cmpi eq, %arg1, %c1_i32 : i32
    %10 = arith.extui %9 : i1 to i32
    %c0_i32_6 = arith.constant 0 : i32
    %11 = arith.cmpi ne, %10, %c0_i32_6 : i32
    scf.if %11 {
      %c0_7 = arith.constant 0 : index
      %c0_8 = arith.constant 0 : index
      %12 = vector.load %arg7[%c0_7, %c0_8] : memref<128x128xf32, #tpu.memory_space<vmem>>, vector<128x128xf32>
      %13 = arith.truncf %12 : vector<128x128xf32> to vector<128x128xbf16>
      %c0_9 = arith.constant 0 : index
      %c0_10 = arith.constant 0 : index
      %14 = vector.load %arg5[%c0_9, %c0_10] : memref<128x128xbf16, #tpu.memory_space<vmem>>, vector<128x128xbf16>
      %cst_11 = arith.constant dense<0.000000e+00> : vector<128x128xf32>
      %15 = tpu.matmul %13, %14, %cst_11 {dimension_numbers = #tpu.dot_dimension_numbers<[1], [0], [0], [1], [0, 0, 1, 1], [], []>} : vector<128x128xbf16>, vector<128x128xbf16>, vector<128x128xf32> -> vector<128x128xf32>
      %c0_12 = arith.constant 0 : index
      %c0_13 = arith.constant 0 : index
      %16 = vector.load %arg6[%c0_12, %c0_13] : memref<1x128xf32, #tpu.memory_space<vmem>>, vector<1x128xf32>
      %17 = vector.broadcast %16 : vector<1x128xf32> to vector<128x128xf32>
      %18 = arith.addf %15, %17 : vector<128x128xf32>
      %c0_14 = arith.constant 0 : index
      %c0_15 = arith.constant 0 : index
      %19 = vector.load %arg4[%c0_14, %c0_15] : memref<128x128xf32, #tpu.memory_space<vmem>>, vector<128x128xf32>
      %20 = arith.addf %18, %19 : vector<128x128xf32>
      %c0_16 = arith.constant 0 : index
      %c0_17 = arith.constant 0 : index
      %21 = vector.load %arg7[%c0_16, %c0_17] : memref<128x128xf32, #tpu.memory_space<vmem>>, vector<128x128xf32>
      tpu.vector_store %arg7[%c0_16, %c0_17], %20 {strides = array<i32>} : memref<128x128xf32, #tpu.memory_space<vmem>>, vector<128x128xf32>,
    } else {
    }
    return
  }
  func.func @transform_0(%arg0: i32, %arg1: i32) -> (i32, i32) {
    %c0_i32 = arith.constant 0 : i32
    return %arg0, %arg1 : i32, i32
  }
  func.func @transform_1(%arg0: i32, %arg1: i32) -> (i32, i32) {
    %c0_i32 = arith.constant 0 : i32
    %c0_i32_0 = arith.constant 0 : i32
    return %arg1, %c0_i32 : i32, i32
  }
  func.func @transform_2(%arg0: i32, %arg1: i32) -> (i32, i32) {
    %c0_i32 = arith.constant 0 : i32
    %c0_i32_0 = arith.constant 0 : i32
    return %arg0, %c0_i32 : i32, i32
  }
  func.func @transform_3(%arg0: i32, %arg1: i32) -> (i32, i32) {
    %c0_i32 = arith.constant 0 : i32
    %c0_i32_0 = arith.constant 0 : i32
    %c0_i32_1 = arith.constant 0 : i32
    return %c0_i32, %c0_i32_0 : i32, i32
  }
  func.func @transform_4(%arg0: i32, %arg1: i32) -> (i32, i32) {
    %c0_i32 = arith.constant 0 : i32
    %c0_i32_0 = arith.constant 0 : i32
    %c0_i32_1 = arith.constant 0 : i32
    return %c0_i32, %c0_i32_0 : i32, i32
  }
  func.func @transform_5(%arg0: i32, %arg1: i32) -> (i32, i32) {
    %c0_i32 = arith.constant 0 : i32
    %c0_i32_0 = arith.constant 0 : i32
    return %arg0, %c0_i32 : i32, i32
  }
}

</mosaic_0001>

<bundles_post_ra>
// kernel: deepgcn_layer.1
= control target key start
LH: loop header
LB: loop body
LE: loop exit
PB: predicated region body
PF: predicated region fallthrough
CT: control target
= control target key end

     0   :  { %s1372_s18 = smov 0   ;;  %s1374_s19 = smov 0   ;;  %s1665_s0 = inlined_call_operand.vmem [shape: bf16[256,256], index: 0, kind: input, shape index: {}]   ;;  %s1666_s1 = inlined_call_operand.vmem [shape: bf16[256,128], index: 1, kind: input, shape index: {}]   ;;  %s1667_s2 = inlined_call_operand.vmem [shape: f32[256,128], index: 2, kind: input, shape index: {}]   ;;  %s1668_s3 = inlined_call_operand.vmem [shape: bf16[128,128], index: 3, kind: input, shape index: {}]   ;;  %s1669_s4 = inlined_call_operand.vmem [shape: f32[1,128], index: 4, kind: input, shape index: {}]   ;;  %s1670_s5 = inlined_call_operand.vmem [shape: f32[256,128], index: 5, kind: output, shape index: {}]  }
   0x1   :  { %s1376_s20 = smov 0   ;;  %s1378_s21 = smov 0  }
   0x2   :  { %s1380_s22 = smov 0   ;;  %s1382_s23 = smov 0  }
   0x3   :  { %s1384_s24 = smov 0  }
   0x4 LB: > { %s24_s25 = sadd.s32 1, %s1332_s22  ;;  %s27_s26 = sadd.s32 1, %s1336_s23  ;;  %s1340_s24 = sphi %s1384_s24, %s15_s24   ;;  %s1336_s23 = sphi %s1382_s23, %s1676_s23   ;;  %s1332_s22 = sphi %s1380_s22, %s1675_s22   ;;  %s1328_s21 = sphi %s1378_s21, %s1674_s21   ;;  %s1324_s20 = sphi %s1376_s20, %s1673_s20   ;;  %s1320_s19 = sphi %s1374_s19, %s1672_s19   ;;  %s1316_s18 = sphi %s1372_s18, %s1671_s18  }
   0x5   : > { %p25_p0 = scmp.ge.s32.totalorder %s24_s25, 2  ;;  %p43_p1 = scmp.ne.s32.totalorder %s1320_s19, %s1316_s18 }
   0x6   : > { %p44_p2 = scmp.eq.s32.totalorder %s1340_s24, 0  ;;  %s36_s30 = sadd.s32 1, %s1320_s19 }
   0x7   : > { %s1678_s25 = smov (%p25_p0, %s24_s25), 0  ;;  %s1680_s26 = smov (!%p25_p0, %s27_s26), %s1336_s23 }
   0x8   : > { %p45_p3 = por %p44_p2, %p43_p1  ;;  %p29_p4 = scmp.ge.s32.totalorder %s1680_s26, 2 }
   0x9   : > { %s32_s27 = ssub.s32 %s1332_s22, %s1678_s25  ;;  %p1034_p6 = scmp.ge.s32.totalorder %s1340_s24, 4 }
   0xa   : > { %s1682_s26 = smov (%p29_p4, %s1680_s26), 0 }
   0xb   : > { %s31_s28 = ssub.s32 %s1336_s23, %s1682_s26  ;;  %195 = sbr.rel (%p1034_p6) target bundleno = 34 (0x22), region = 24 }
   0xc   : > { %s33_s29 = sor.u32 %s32_s27, %s31_s28 }
   0xd   : > { %p34_p5 = scmp.eq.s32.totalorder %s33_s29, 0 }
   0xf   : > { %s1423_s6 = scalar_select %p34_p5, %s1320_s19, %s36_s30  }
  0x12   : > { %198 = sbr.rel (!%p45_p3) target bundleno = 34 (0x22), region = 28  ;;  %s200_s7 = sand.u32 (%p45_p3), 1, %s1320_s19  }
  0x13   : > { %s1077_s8 = sshll.u32 (%p45_p3), %s1336_s23, 5  ;;  %s1035_s9 = sshll.u32 (%p45_p3), %s200_s7, 6 }
  0x14   : > { %s205_s10 = sadd.s32 (%p45_p3), %s1332_s22, %s1077_s8  ;;  %s202_s15 = scalar_lea.vmem (%p45_p3), [#allocation2], %s1035_s9 }
  0x15   : > { %s1038_s11 = sshll.u32 (%p45_p3), %s205_s10, 2 }
  0x16   : > { %s1432_s14 = scalar_lea.vmem (%p45_p3), %s1665_s0, %s1038_s11 }
  0x17   : > { %v223_v0 = vld [vmem:[%s1432_s14] sm:$0xf] (%p45_p3)  ;;  %v225_v1 = vld [vmem:[%s1432_s14 + $0x8] sm:$0xf] (%p45_p3)  ;;  %v227_v2 = vld [vmem:[%s1432_s14 + $0x10] sm:$0xf] (%p45_p3) }
  0x18   : > { %224 = vst [vmem:[%s202_s15] sm:$0xf] (%p45_p3), %v223_v0  ;;  %226 = vst [vmem:[%s202_s15 + $0x4] sm:$0xf] (%p45_p3), %v225_v1  ;;  %v229_v3 = vld [vmem:[%s1432_s14 + $0x18] sm:$0xf] (%p45_p3) }
  0x19   : > { %228 = vst [vmem:[%s202_s15 + $0x8] sm:$0xf] %v227_v2  ;;  %v231_v4 = vld [vmem:[%s1432_s14 + $0x20] sm:$0xf]  ;;  %v233_v5 = vld [vmem:[%s1432_s14 + $0x28] sm:$0xf] }
  0x1a   : > { %230 = vst [vmem:[%s202_s15 + $0xc] sm:$0xf] %v229_v3  ;;  %232 = vst [vmem:[%s202_s15 + $0x10] sm:$0xf] %v231_v4  ;;  %v235_v6 = vld [vmem:[%s1432_s14 + $0x30] sm:$0xf] }
  0x1b   : > { %234 = vst [vmem:[%s202_s15 + $0x14] sm:$0xf] %v233_v5  ;;  %v237_v7 = vld [vmem:[%s1432_s14 + $0x38] sm:$0xf]  ;;  %v239_v8 = vld [vmem:[%s1432_s14 + $0x40] sm:$0xf] }
  0x1c   : > { %236 = vst [vmem:[%s202_s15 + $0x18] sm:$0xf] %v235_v6  ;;  %238 = vst [vmem:[%s202_s15 + $0x1c] sm:$0xf] %v237_v7  ;;  %v241_v9 = vld [vmem:[%s1432_s14 + $0x48] sm:$0xf] }
  0x1d   : > { %240 = vst [vmem:[%s202_s15 + $0x20] sm:$0xf] %v239_v8  ;;  %v243_v10 = vld [vmem:[%s1432_s14 + $0x50] sm:$0xf]  ;;  %v245_v11 = vld [vmem:[%s1432_s14 + $0x58] sm:$0xf] }
  0x1e   : > { %242 = vst [vmem:[%s202_s15 + $0x24] sm:$0xf] %v241_v9  ;;  %244 = vst [vmem:[%s202_s15 + $0x28] sm:$0xf] %v243_v10  ;;  %v247_v12 = vld [vmem:[%s1432_s14 + $0x60] sm:$0xf] }
  0x1f   : > { %246 = vst [vmem:[%s202_s15 + $0x2c] sm:$0xf] %v245_v11  ;;  %v249_v13 = vld [vmem:[%s1432_s14 + $0x68] sm:$0xf]  ;;  %v251_v14 = vld [vmem:[%s1432_s14 + $0x70] sm:$0xf] }
  0x20   : > { %248 = vst [vmem:[%s202_s15 + $0x30] sm:$0xf] %v247_v12  ;;  %250 = vst [vmem:[%s202_s15 + $0x34] sm:$0xf] %v249_v13  ;;  %v253_v15 = vld [vmem:[%s1432_s14 + $0x78] sm:$0xf] }
  0x21   : > { %252 = vst [vmem:[%s202_s15 + $0x38] sm:$0xf] %v251_v14  ;;  %254 = vst [vmem:[%s202_s15 + $0x3c] sm:$0xf] %v253_v15 }
  0x22 PF: > { %p1039_p7 = scmp.ge.s32.totalorder %s1340_s24, 1  ;;  %p326_p8 = scmp.lt.s32.totalorder %s1340_s24, 5 }
  0x24   : > { %p327_p9 = pnand %p1039_p7, %p326_p8 }
  0x25   : > { %s1041_s16 = sshll.u32 (!%p327_p9), %s1324_s20, 4  ;;  %s1043_s17 = sshll.u32 (!%p327_p9), %s1328_s21, 4 }
  0x26   : > { %330 = sbr.rel (%p327_p9) target bundleno = 580 (0x244), region = 77  ;;  %p372_p10 = scmp.lt.s32.totalorder (!%p327_p9), %s1041_s16, 31 }
  0x27   : > { %p378_p11 = scmp.lt.s32.totalorder (!%p327_p9), %s1043_s17, 31  ;;  %s333_s28 = sand.u32 (!%p327_p9), 1, %s1316_s18  }
  0x28   : > { %s1040_s18 = sshll.u32 (!%p327_p9), %s333_s28, 6  ;;  %p1063_p12 = scmp.ne.s32.totalorder (!%p327_p9), %s1324_s20, 0 }
  0x29   : > { %s1474_s14 = scalar_lea.vmem (!%p327_p9), [#allocation2], %s1040_s18 }
  0x2a   : > { %v1270_v20 = vld [vmem:[%s1474_s14] sm:$0xff] (!%p327_p9)   ;;  %v1272_v26 = vld [vmem:[%s1474_s14 + $0x8] sm:$0xff] (!%p327_p9)   ;;  %v1274_v28 = vld [vmem:[%s1474_s14 + $0x10] sm:$0xff] (!%p327_p9)  }
  0x2b   : > { %v1271_v21 = vld [vmem:[%s1474_s14 + $0x20] sm:$0xff] (!%p327_p9)   ;;  %1126 = vmatprep.mubr.bf16.mxu0 (!%p327_p9), %v1270_v20  ;;  %v1273_v27 = vld [vmem:[%s1474_s14 + $0x28] sm:$0xff] (!%p327_p9)   ;;  %v1275_v29 = vld [vmem:[%s1474_s14 + $0x30] sm:$0xff] (!%p327_p9)  }
  0x2c   : > { %1134 = vmatprep.mubr.bf16.mxu1 (!%p327_p9), %v1271_v21  ;;  %v1276_v30 = vld [vmem:[%s1474_s14 + $0x18] sm:$0xff] (!%p327_p9)  }
  0x2d   : > { %s1684_s16 = smov (!%p372_p10, %s1041_s16), 31  ;;  %s1686_s17 = smov (!%p378_p11, %s1043_s17), 31  ;;  %v1277_v31 = vld [vmem:[%s1474_s14 + $0x38] sm:$0xff]  }
  0x2e   : > { %s1042_s27 = sshll.u32 %s1684_s16, 2  ;;  %s1044_s8 = sshll.u32 %s1686_s17, 3 }
  0x2f   : > { %s1458_s7 = scalar_lea.vmem %s1666_s1, %s1042_s27  ;;  %s1463_s21 = scalar_lea.vmem %s1667_s2, %s1044_s8 }
  0x30   : > { %s1468_s13 = scalar_lea.vmem %s1670_s5, %s1044_s8  ;;  %v1262_v16 = vld [vmem:[%s1458_s7] sm:$0xff]   ;;  %v1263_v17 = vld [vmem:[%s1458_s7 + $0x8] sm:$0xff]   ;;  %v1264_v18 = vld [vmem:[%s1458_s7 + $0x10] sm:$0xff]  }
  0x31   : > { %1110 = vmatprep.subr.bf16.mxu0 %v1262_v16  ;;  %1174 = vmatprep.subr.bf16.mxu1 %v1262_v16  ;;  %v1265_v19 = vld [vmem:[%s1458_s7 + $0x18] sm:$0xff]   ;;  %v1266_v22 = vld [vmem:[%s1458_s7 + $0x20] sm:$0xff]   ;;  %v1267_v23 = vld [vmem:[%s1458_s7 + $0x28] sm:$0xff]  }
  0x32   : > { %1111 = vmatpush3.bf16.msra.mxu0 %v1262_v16  ;;  %1182 = vmatpush3.bf16.msra.mxu1 %v1262_v16  ;;  %v1268_v24 = vld [vmem:[%s1458_s7 + $0x30] sm:$0xff]   ;;  %v1269_v25 = vld [vmem:[%s1458_s7 + $0x38] sm:$0xff]  }
  0x33   : > { %1112 = vmatprep.subr.bf16.mxu0 %v1263_v17  ;;  %1175 = vmatprep.subr.bf16.mxu1 %v1263_v17 }
  0x36   : > { %1113 = vmatpush3.bf16.msra.mxu0 %v1263_v17  ;;  %1183 = vmatpush3.bf16.msra.mxu1 %v1263_v17 }
  0x37   : > { %1114 = vmatprep.subr.bf16.mxu0 %v1264_v18  ;;  %1176 = vmatprep.subr.bf16.mxu1 %v1264_v18 }
  0x3a   : > { %1115 = vmatpush3.bf16.msra.mxu0 %v1264_v18  ;;  %1184 = vmatpush3.bf16.msra.mxu1 %v1264_v18 }
  0x3b   : > { %1116 = vmatprep.subr.bf16.mxu0 %v1265_v19  ;;  %1177 = vmatprep.subr.bf16.mxu1 %v1265_v19 }
  0x3e   : > { %1117 = vmatpush3.bf16.msra.mxu0 %v1265_v19  ;;  %1185 = vmatpush3.bf16.msra.mxu1 %v1265_v19 }
  0x3f   : > { %1118 = vmatprep.subr.bf16.mxu0 %v1266_v22  ;;  %1178 = vmatprep.subr.bf16.mxu1 %v1266_v22 }
  0x42   : > { %1119 = vmatpush3.bf16.msra.mxu0 %v1266_v22  ;;  %1186 = vmatpush3.bf16.msra.mxu1 %v1266_v22 }
  0x43   : > { %1120 = vmatprep.subr.bf16.mxu0 %v1267_v23  ;;  %1179 = vmatprep.subr.bf16.mxu1 %v1267_v23 }
  0x46   : > { %1121 = vmatpush3.bf16.msra.mxu0 %v1267_v23  ;;  %1187 = vmatpush3.bf16.msra.mxu1 %v1267_v23 }
  0x47   : > { %1122 = vmatprep.subr.bf16.mxu0 %v1268_v24  ;;  %1180 = vmatprep.subr.bf16.mxu1 %v1268_v24 }
  0x4a   : > { %1123 = vmatpush3.bf16.msra.mxu0 %v1268_v24  ;;  %1188 = vmatpush3.bf16.msra.mxu1 %v1268_v24 }
  0x4b   : > { %1124 = vmatprep.subr.bf16.mxu0 %v1269_v25  ;;  %1181 = vmatprep.subr.bf16.mxu1 %v1269_v25 }
  0x4e   : > { %1125 = vmatpush3.bf16.msra.mxu0 %v1269_v25  ;;  %1189 = vmatpush3.bf16.msra.mxu1 %v1269_v25 }
  0x51   : > { %1127 = vmatmul.mubr.bf16.vlgmr.msra.gmra.mrb[0].mxu0 %v1272_v26  ;;  %1135 = vmatmul.mubr.bf16.vlgmr.msra.gmra.mrb[0].mxu1 %v1273_v27 }
  0x52   : > { %1130 = vmatprep.mubr.bf16.mxu0 %v1274_v28  ;;  %1138 = vmatprep.mubr.bf16.mxu1 %v1275_v29 }
  0x59   : > { %1131 = vmatmul.mubr.bf16.gmra.mrb[4].mxu0 %v1276_v30  ;;  %1139 = vmatmul.mubr.bf16.gmra.mrb[4].mxu1 %v1277_v31 }
 0x124   : > { %v1128_v32 = vpop.f32.mrb[0].mxu0  ;;  %v1488_v33 = vpop.f32.mrb[0].mxu1 }
 0x125   : > { %v552_v34 = vpop.f32.mrb[1].mxu0  ;;  %v584_v35 = vpop.f32.mrb[1].mxu1  ;;  %621 = vst [vmem:[%s1468_s13 + $0x10] sm:$0xff] (!%p1063_p12), %v1128_v32  ;;  %629 = vst [vmem:[%s1468_s13 + $0x50] sm:$0xff] (!%p1063_p12), %v1488_v33 }
 0x126   : > { %v1129_v36 = vpop.f32.mrb[2].mxu0  ;;  %v1137_v37 = vpop.f32.mrb[2].mxu1  ;;  %619 = vst [vmem:[%s1468_s13] sm:$0xff] (!%p1063_p12), %v552_v34  ;;  %627 = vst [vmem:[%s1468_s13 + $0x40] sm:$0xff] (!%p1063_p12), %v584_v35 }
 0x127   : > { %v555_v38 = vpop.f32.mrb[3].mxu0  ;;  %v587_v39 = vpop.f32.mrb[3].mxu1  ;;  %622 = vst [vmem:[%s1468_s13 + $0x18] sm:$0xff] (!%p1063_p12), %v1129_v36  ;;  %630 = vst [vmem:[%s1468_s13 + $0x58] sm:$0xff] (!%p1063_p12), %v1137_v37 }
 0x128   : > { %620 = vst [vmem:[%s1468_s13 + $0x8] sm:$0xff] (!%p1063_p12), %v555_v38  ;;  %628 = vst [vmem:[%s1468_s13 + $0x48] sm:$0xff] (!%p1063_p12), %v587_v39 }
 0x129   : > { %618 = sbr.rel (%p1063_p12) target bundleno = 305 (0x131), region = 85 }
 0x12c   : > { %v1132_v40 = vpop.f32.mrb[4].mxu0  ;;  %v1490_v41 = vpop.f32.mrb[4].mxu1 }
 0x12d   : > { %v568_v42 = vpop.f32.mrb[5].mxu0  ;;  %v600_v43 = vpop.f32.mrb[5].mxu1  ;;  %625 = vst [vmem:[%s1468_s13 + $0x30] sm:$0xff] (!%p1063_p12), %v1132_v40  ;;  %633 = vst [vmem:[%s1468_s13 + $0x70] sm:$0xff] (!%p1063_p12), %v1490_v41 }
 0x12e   : > { %v1133_v44 = vpop.f32.mrb[6].mxu0  ;;  %v1492_v45 = vpop.f32.mrb[6].mxu1  ;;  %623 = vst [vmem:[%s1468_s13 + $0x20] sm:$0xff] (!%p1063_p12), %v568_v42  ;;  %631 = vst [vmem:[%s1468_s13 + $0x60] sm:$0xff] (!%p1063_p12), %v600_v43 }
 0x12f   : > { %v571_v46 = vpop.f32.mrb[7].mxu0  ;;  %v603_v47 = vpop.f32.mrb[7].mxu1  ;;  %626 = vst [vmem:[%s1468_s13 + $0x38] sm:$0xff] (!%p1063_p12), %v1133_v44  ;;  %634 = vst [vmem:[%s1468_s13 + $0x78] sm:$0xff] (!%p1063_p12), %v1492_v45 }
 0x130   : > { %624 = vst [vmem:[%s1468_s13 + $0x28] sm:$0xff] %v571_v46  ;;  %632 = vst [vmem:[%s1468_s13 + $0x68] sm:$0xff] %v603_v47 }
 0x131 PF: > { %p1064_p13 = scmp.eq.s32.totalorder %s1324_s20, 0 }
 0x132   : > { %v639_v48 = vld [vmem:[%s1468_s13] sm:$0xff] (!%p1064_p13)  ;;  %v640_v49 = vld [vmem:[%s1468_s13 + $0x8] sm:$0xff] (!%p1064_p13)  ;;  %v641_v50 = vld [vmem:[%s1468_s13 + $0x10] sm:$0xff] (!%p1064_p13) }
 0x133   : > { %638 = sbr.rel (%p1064_p13) target bundleno = 318 (0x13e), region = 89  ;;  %v655_v51 = vadd.f32 (!%p1064_p13), %v639_v48, %v552_v34  ;;  %v656_v52 = vadd.f32 (!%p1064_p13), %v640_v49, %v555_v38  ;;  %v657_v53 = vadd.f32 (!%p1064_p13), %v1128_v32, %v641_v50  ;;  %v642_v54 = vld [vmem:[%s1468_s13 + $0x18] sm:$0xff] (!%p1064_p13)  ;;  %v647_v62 = vld [vmem:[%s1468_s13 + $0x40] sm:$0xff] (!%p1064_p13)  ;;  %v648_v2 = vld [vmem:[%s1468_s13 + $0x48] sm:$0xff] (!%p1064_p13) }
 0x134   : > { %v658_v57 = vadd.f32 (!%p1064_p13), %v1129_v36, %v642_v54  ;;  %v663_v1 = vadd.f32 (!%p1064_p13), %v647_v62, %v584_v35  ;;  %v649_v3 = vld [vmem:[%s1468_s13 + $0x50] sm:$0xff] (!%p1064_p13)  ;;  %v650_v4 = vld [vmem:[%s1468_s13 + $0x58] sm:$0xff] (!%p1064_p13)  ;;  %v664_v5 = vadd.f32 (!%p1064_p13), %v648_v2, %v587_v39 }
 0x135   : > { %v645_v60 = vld [vmem:[%s1468_s13 + $0x30] sm:$0xff] (!%p1064_p13)  ;;  %671 = vst [vmem:[%s1468_s13] sm:$0xff] (!%p1064_p13), %v655_v51  ;;  %672 = vst [vmem:[%s1468_s13 + $0x8] sm:$0xff] (!%p1064_p13), %v656_v52  ;;  %v665_v6 = vadd.f32 (!%p1064_p13), %v1488_v33, %v649_v3  ;;  %v666_v7 = vadd.f32 (!%p1064_p13), %v1137_v37, %v650_v4 }
 0x136   : > { %v643_v55 = vld [vmem:[%s1468_s13 + $0x20] sm:$0xff] (!%p1064_p13)  ;;  %673 = vst [vmem:[%s1468_s13 + $0x10] sm:$0xff] (!%p1064_p13), %v657_v53  ;;  %v661_v63 = vadd.f32 (!%p1064_p13), %v1132_v40, %v645_v60  ;;  %674 = vst [vmem:[%s1468_s13 + $0x18] sm:$0xff] (!%p1064_p13), %v658_v57  ;;  %v653_v10 = vld [vmem:[%s1468_s13 + $0x70] sm:$0xff] (!%p1064_p13) }
 0x137   : > { %v644_v56 = vld [vmem:[%s1468_s13 + $0x28] sm:$0xff] (!%p1064_p13)  ;;  %v659_v58 = vadd.f32 (!%p1064_p13), %v643_v55, %v568_v42  ;;  %v646_v61 = vld [vmem:[%s1468_s13 + $0x38] sm:$0xff] (!%p1064_p13)  ;;  %v651_v8 = vld [vmem:[%s1468_s13 + $0x60] sm:$0xff] (!%p1064_p13)  ;;  %679 = vst [vmem:[%s1468_s13 + $0x40] sm:$0xff] (!%p1064_p13), %v663_v1  ;;  %v669_v13 = vadd.f32 (!%p1064_p13), %v1490_v41, %v653_v10 }
 0x138   : > { %v660_v59 = vadd.f32 (!%p1064_p13), %v644_v56, %v571_v46  ;;  %v662_v0 = vadd.f32 (!%p1064_p13), %v1133_v44, %v646_v61  ;;  %v652_v9 = vld [vmem:[%s1468_s13 + $0x68] sm:$0xff] (!%p1064_p13)  ;;  %677 = vst [vmem:[%s1468_s13 + $0x30] sm:$0xff] (!%p1064_p13), %v661_v63  ;;  %v667_v11 = vadd.f32 (!%p1064_p13), %v651_v8, %v600_v43  ;;  %v654_v14 = vld [vmem:[%s1468_s13 + $0x78] sm:$0xff] (!%p1064_p13)  ;;  %680 = vst [vmem:[%s1468_s13 + $0x48] sm:$0xff] (!%p1064_p13), %v664_v5 }
 0x139   : > { %675 = vst [vmem:[%s1468_s13 + $0x20] sm:$0xff] (!%p1064_p13), %v659_v58  ;;  %v668_v12 = vadd.f32 (!%p1064_p13), %v652_v9, %v603_v47  ;;  %681 = vst [vmem:[%s1468_s13 + $0x50] sm:$0xff] (!%p1064_p13), %v665_v6  ;;  %v670_v15 = vadd.f32 (!%p1064_p13), %v1492_v45, %v654_v14 }
 0x13a   : > { %676 = vst [vmem:[%s1468_s13 + $0x28] sm:$0xff] %v660_v59  ;;  %678 = vst [vmem:[%s1468_s13 + $0x38] sm:$0xff] %v662_v0 }
 0x13b   : > { %682 = vst [vmem:[%s1468_s13 + $0x58] sm:$0xff] %v666_v7  ;;  %683 = vst [vmem:[%s1468_s13 + $0x60] sm:$0xff] %v667_v11 }
 0x13c   : > { %684 = vst [vmem:[%s1468_s13 + $0x68] sm:$0xff] %v668_v12  ;;  %685 = vst [vmem:[%s1468_s13 + $0x70] sm:$0xff] %v669_v13 }
 0x13d   : > { %686 = vst [vmem:[%s1468_s13 + $0x78] sm:$0xff] %v670_v15 }
 0x13e PF: > { %p1065_p0 = scmp.ne.s32.totalorder %s1324_s20, 1 }
 0x13f   : > { %v1278_v16 = vld [vmem:[%s1668_s3] sm:$0xff] (!%p1065_p0)   ;;  %v1279_v17 = vld [vmem:[%s1668_s3 + $0x8] sm:$0xff] (!%p1065_p0)   ;;  %v1280_v18 = vld [vmem:[%s1668_s3 + $0x10] sm:$0xff] (!%p1065_p0)  }
 0x140   : > { %690 = sbr.rel (%p1065_p0) target bundleno = 580 (0x244), region = 93  ;;  %1142 = vmatprep.subr.bf16.mxu0 (!%p1065_p0), %v1278_v16  ;;  %1190 = vmatprep.subr.bf16.mxu1 (!%p1065_p0), %v1278_v16  ;;  %v1281_v19 = vld [vmem:[%s1668_s3 + $0x18] sm:$0xff] (!%p1065_p0)   ;;  %v691_v20 = vld [vmem:[%s1468_s13] sm:$0xff] (!%p1065_p0)  ;;  %v692_v21 = vld [vmem:[%s1468_s13 + $0x8] sm:$0xff] (!%p1065_p0) }
 0x141   : > { %1143 = vmatpush3.bf16.msra.mxu0 (!%p1065_p0), %v1278_v16  ;;  %1198 = vmatpush3.bf16.msra.mxu1 (!%p1065_p0), %v1278_v16  ;;  %v707_v23 = vpack.c.bf16 (!%p1065_p0), %v692_v21, %v691_v20  ;;  %v1282_v26 = vld [vmem:[%s1668_s3 + $0x20] sm:$0xff] (!%p1065_p0)   ;;  %v1283_v27 = vld [vmem:[%s1668_s3 + $0x28] sm:$0xff] (!%p1065_p0)   ;;  %v1284_v28 = vld [vmem:[%s1668_s3 + $0x30] sm:$0xff] (!%p1065_p0)  }
 0x142   : > { %1144 = vmatprep.subr.bf16.mxu0 (!%p1065_p0), %v1279_v17  ;;  %1191 = vmatprep.subr.bf16.mxu1 (!%p1065_p0), %v1279_v17  ;;  %v699_v22 = vld [vmem:[%s1468_s13 + $0x40] sm:$0xff] (!%p1065_p0)  ;;  %v1285_v29 = vld [vmem:[%s1668_s3 + $0x38] sm:$0xff] (!%p1065_p0)   ;;  %v693_v30 = vld [vmem:[%s1468_s13 + $0x10] sm:$0xff] (!%p1065_p0) }
 0x143   : > { %v700_v24 = vld [vmem:[%s1468_s13 + $0x48] sm:$0xff] (!%p1065_p0)  ;;  %1158 = vmatprep.mubr.bf16.mxu0 (!%p1065_p0), %v707_v23  ;;  %v694_v31 = vld [vmem:[%s1468_s13 + $0x18] sm:$0xff] (!%p1065_p0)  ;;  %v703_v36 = vld [vmem:[%s1468_s13 + $0x60] sm:$0xff] (!%p1065_p0) }
 0x144   : > { %v711_v25 = vpack.c.bf16 (!%p1065_p0), %v700_v24, %v699_v22  ;;  %v701_v32 = vld [vmem:[%s1468_s13 + $0x50] sm:$0xff] (!%p1065_p0)  ;;  %v702_v33 = vld [vmem:[%s1468_s13 + $0x58] sm:$0xff] (!%p1065_p0)  ;;  %v695_v34 = vld [vmem:[%s1468_s13 + $0x20] sm:$0xff] (!%p1065_p0)  ;;  %v708_v38 = vpack.c.bf16 (!%p1065_p0), %v694_v31, %v693_v30 }
 0x145   : > { %1145 = vmatpush3.bf16.msra.mxu0 (!%p1065_p0), %v1279_v17  ;;  %1199 = vmatpush3.bf16.msra.mxu1 (!%p1065_p0), %v1279_v17  ;;  %v696_v35 = vld [vmem:[%s1468_s13 + $0x28] sm:$0xff] (!%p1065_p0)  ;;  %v712_v39 = vpack.c.bf16 (!%p1065_p0), %v702_v33, %v701_v32  ;;  %v697_v42 = vld [vmem:[%s1468_s13 + $0x30] sm:$0xff] (!%p1065_p0)  ;;  %v698_v43 = vld [vmem:[%s1468_s13 + $0x38] sm:$0xff] (!%p1065_p0) }
 0x146   : > { %1146 = vmatprep.subr.bf16.mxu0 (!%p1065_p0), %v1280_v18  ;;  %1192 = vmatprep.subr.bf16.mxu1 (!%p1065_p0), %v1280_v18  ;;  %v704_v37 = vld [vmem:[%s1468_s13 + $0x68] sm:$0xff] (!%p1065_p0)  ;;  %v709_v40 = vpack.c.bf16 (!%p1065_p0), %v696_v35, %v695_v34  ;;  %v705_v44 = vld [vmem:[%s1468_s13 + $0x70] sm:$0xff] (!%p1065_p0)  ;;  %v706_v45 = vld [vmem:[%s1468_s13 + $0x78] sm:$0xff] (!%p1065_p0)  ;;  %v710_v46 = vpack.c.bf16 (!%p1065_p0), %v698_v43, %v697_v42 }
 0x147   : > { %1166 = vmatprep.mubr.bf16.mxu1 %v711_v25  ;;  %v713_v41 = vpack.c.bf16 %v704_v37, %v703_v36  ;;  %v714_v47 = vpack.c.bf16 %v706_v45, %v705_v44  ;;  %v1594_v48 = vld [vmem:[%s1669_s4] ss:$0 sm:$0xff]  ;;  %v885_v50 = vld [vmem:[%s1463_s21 + $0x10] sm:$0xff]  ;;  %v886_v62 = vld [vmem:[%s1463_s21 + $0x18] sm:$0xff] }
 0x148   : > { %v893_v52 = vld [vmem:[%s1463_s21 + $0x50] sm:$0xff]  ;;  %v883_v56 = vld [vmem:[%s1463_s21] sm:$0xff]  ;;  %v894_v0 = vld [vmem:[%s1463_s21 + $0x58] sm:$0xff] }
 0x149   : > { %1147 = vmatpush3.bf16.msra.mxu0 %v1280_v18  ;;  %1200 = vmatpush3.bf16.msra.mxu1 %v1280_v18  ;;  %v891_v58 = vld [vmem:[%s1463_s21 + $0x40] sm:$0xff]  ;;  %v884_v6 = vld [vmem:[%s1463_s21 + $0x8] sm:$0xff]  ;;  %v889_v18 = vld [vmem:[%s1463_s21 + $0x30] sm:$0xff] }
 0x14a   : > { %1148 = vmatprep.subr.bf16.mxu0 %v1281_v19  ;;  %1193 = vmatprep.subr.bf16.mxu1 %v1281_v19  ;;  %v892_v8 = vld [vmem:[%s1463_s21 + $0x48] sm:$0xff]  ;;  %v897_v20 = vld [vmem:[%s1463_s21 + $0x70] sm:$0xff]  ;;  %v887_v24 = vld [vmem:[%s1463_s21 + $0x20] sm:$0xff] }
 0x14b   : > { %v890_v30 = vld [vmem:[%s1463_s21 + $0x38] sm:$0xff] }
 0x14c   : > { %v898_v32 = vld [vmem:[%s1463_s21 + $0x78] sm:$0xff] }
 0x14d   : > { %1149 = vmatpush3.bf16.msra.mxu0 %v1281_v19  ;;  %1201 = vmatpush3.bf16.msra.mxu1 %v1281_v19 }
 0x14e   : > { %1150 = vmatprep.subr.bf16.mxu0 %v1282_v26  ;;  %1194 = vmatprep.subr.bf16.mxu1 %v1282_v26 }
 0x151   : > { %1151 = vmatpush3.bf16.msra.mxu0 %v1282_v26  ;;  %1202 = vmatpush3.bf16.msra.mxu1 %v1282_v26  ;;  %v895_v26 = vld [vmem:[%s1463_s21 + $0x60] sm:$0xff] }
 0x152   : > { %1152 = vmatprep.subr.bf16.mxu0 %v1283_v27  ;;  %1195 = vmatprep.subr.bf16.mxu1 %v1283_v27 }
 0x155   : > { %1153 = vmatpush3.bf16.msra.mxu0 %v1283_v27  ;;  %1203 = vmatpush3.bf16.msra.mxu1 %v1283_v27 }
 0x156   : > { %1154 = vmatprep.subr.bf16.mxu0 %v1284_v28  ;;  %1196 = vmatprep.subr.bf16.mxu1 %v1284_v28 }
 0x159   : > { %1155 = vmatpush3.bf16.msra.mxu0 %v1284_v28  ;;  %1204 = vmatpush3.bf16.msra.mxu1 %v1284_v28 }
 0x15a   : > { %1156 = vmatprep.subr.bf16.mxu0 %v1285_v29  ;;  %1197 = vmatprep.subr.bf16.mxu1 %v1285_v29 }
 0x15d   : > { %1157 = vmatpush3.bf16.msra.mxu0 %v1285_v29  ;;  %1205 = vmatpush3.bf16.msra.mxu1 %v1285_v29 }
 0x160   : > { %1159 = vmatmul.mubr.bf16.vlgmr.msra.gmra.mrb[0].mxu0 %v708_v38  ;;  %1167 = vmatmul.mubr.bf16.vlgmr.msra.gmra.mrb[0].mxu1 %v712_v39  ;;  %v888_v38 = vld [vmem:[%s1463_s21 + $0x28] sm:$0xff] }
 0x161   : > { %1162 = vmatprep.mubr.bf16.mxu0 %v709_v40  ;;  %1170 = vmatprep.mubr.bf16.mxu1 %v713_v41  ;;  %v896_v40 = vld [vmem:[%s1463_s21 + $0x68] sm:$0xff] }
 0x168   : > { %1163 = vmatmul.mubr.bf16.gmra.mrb[4].mxu0 %v710_v46  ;;  %1171 = vmatmul.mubr.bf16.gmra.mrb[4].mxu1 %v714_v47 }
 0x233   : > { %v1160_v49 = vpop.f32.mrb[0].mxu0  ;;  %v1168_v51 = vpop.f32.mrb[0].mxu1 }
 0x234   : > { %v829_v53 = vadd.f32 %v1160_v49, %v1594_v48  ;;  %v861_v54 = vadd.f32 %v1168_v51, %v1594_v48  ;;  %v820_v55 = vpop.f32.mrb[1].mxu0  ;;  %v852_v57 = vpop.f32.mrb[1].mxu1 }
 0x235   : > { %v821_v59 = vadd.f32 %v1594_v48, %v820_v55  ;;  %v853_v60 = vadd.f32 %v1594_v48, %v852_v57  ;;  %v1161_v61 = vpop.f32.mrb[2].mxu0  ;;  %v1169_v63 = vpop.f32.mrb[2].mxu1 }
 0x236   : > { %v901_v1 = vadd.f32 %v885_v50, %v829_v53  ;;  %v909_v2 = vadd.f32 %v893_v52, %v861_v54  ;;  %v832_v3 = vadd.f32 %v1161_v61, %v1594_v48  ;;  %v864_v4 = vadd.f32 %v1169_v63, %v1594_v48  ;;  %v823_v5 = vpop.f32.mrb[3].mxu0  ;;  %v855_v7 = vpop.f32.mrb[3].mxu1 }
 0x237   : > { %v899_v9 = vadd.f32 %v883_v56, %v821_v59  ;;  %v907_v10 = vadd.f32 %v891_v58, %v853_v60  ;;  %v824_v11 = vadd.f32 %v1594_v48, %v823_v5  ;;  %v856_v12 = vadd.f32 %v1594_v48, %v855_v7 }
 0x238   : > { %917 = vst [vmem:[%s1468_s13 + $0x10] sm:$0xff] %v901_v1  ;;  %925 = vst [vmem:[%s1468_s13 + $0x50] sm:$0xff] %v909_v2  ;;  %v902_v13 = vadd.f32 %v886_v62, %v832_v3  ;;  %v910_v14 = vadd.f32 %v894_v0, %v864_v4 }
 0x239   : > { %915 = vst [vmem:[%s1468_s13] sm:$0xff] %v899_v9  ;;  %923 = vst [vmem:[%s1468_s13 + $0x40] sm:$0xff] %v907_v10  ;;  %v900_v15 = vadd.f32 %v884_v6, %v824_v11  ;;  %v908_v16 = vadd.f32 %v892_v8, %v856_v12 }
 0x23a   : > { %918 = vst [vmem:[%s1468_s13 + $0x18] sm:$0xff] %v902_v13  ;;  %926 = vst [vmem:[%s1468_s13 + $0x58] sm:$0xff] %v910_v14 }
 0x23b   : > { %916 = vst [vmem:[%s1468_s13 + $0x8] sm:$0xff] %v900_v15  ;;  %924 = vst [vmem:[%s1468_s13 + $0x48] sm:$0xff] %v908_v16  ;;  %v1164_v17 = vpop.f32.mrb[4].mxu0  ;;  %v1172_v19 = vpop.f32.mrb[4].mxu1 }
 0x23c   : > { %v845_v21 = vadd.f32 %v1164_v17, %v1594_v48  ;;  %v877_v22 = vadd.f32 %v1172_v19, %v1594_v48  ;;  %v836_v23 = vpop.f32.mrb[5].mxu0  ;;  %v868_v25 = vpop.f32.mrb[5].mxu1 }
 0x23d   : > { %v837_v27 = vadd.f32 %v1594_v48, %v836_v23  ;;  %v869_v28 = vadd.f32 %v1594_v48, %v868_v25  ;;  %v1165_v29 = vpop.f32.mrb[6].mxu0  ;;  %v1173_v31 = vpop.f32.mrb[6].mxu1 }
 0x23e   : > { %v905_v33 = vadd.f32 %v889_v18, %v845_v21  ;;  %v913_v34 = vadd.f32 %v897_v20, %v877_v22  ;;  %v848_v35 = vadd.f32 %v1165_v29, %v1594_v48  ;;  %v880_v36 = vadd.f32 %v1173_v31, %v1594_v48  ;;  %v839_v37 = vpop.f32.mrb[7].mxu0  ;;  %v871_v39 = vpop.f32.mrb[7].mxu1 }
 0x23f   : > { %v903_v41 = vadd.f32 %v887_v24, %v837_v27  ;;  %v911_v42 = vadd.f32 %v895_v26, %v869_v28  ;;  %v840_v43 = vadd.f32 %v1594_v48, %v839_v37  ;;  %v872_v44 = vadd.f32 %v1594_v48, %v871_v39 }
 0x240   : > { %921 = vst [vmem:[%s1468_s13 + $0x30] sm:$0xff] %v905_v33  ;;  %929 = vst [vmem:[%s1468_s13 + $0x70] sm:$0xff] %v913_v34  ;;  %v906_v45 = vadd.f32 %v890_v30, %v848_v35  ;;  %v914_v46 = vadd.f32 %v898_v32, %v880_v36 }
 0x241   : > { %919 = vst [vmem:[%s1468_s13 + $0x20] sm:$0xff] %v903_v41  ;;  %927 = vst [vmem:[%s1468_s13 + $0x60] sm:$0xff] %v911_v42  ;;  %v904_v47 = vadd.f32 %v888_v38, %v840_v43  ;;  %v912_v49 = vadd.f32 %v896_v40, %v872_v44 }
 0x242   : > { %922 = vst [vmem:[%s1468_s13 + $0x38] sm:$0xff] %v906_v45  ;;  %930 = vst [vmem:[%s1468_s13 + $0x78] sm:$0xff] %v914_v46 }
 0x243   : > { %920 = vst [vmem:[%s1468_s13 + $0x28] sm:$0xff] %v904_v47  ;;  %928 = vst [vmem:[%s1468_s13 + $0x68] sm:$0xff] %v912_v49 }
 0x244 PF: > { %s15_s24 = sadd.s32 1, %s1340_s24   ;;  %s1671_s18 = smov %s1320_s19 }
 0x245   : > { %p12_p1 = scmp.ge.s32.totalorder %s15_s24, 6   ;;  %s1672_s19 = smov %s1423_s6 }
 0x246   : > { %s1673_s20 = smov %s1332_s22  ;;  %s1674_s21 = smov %s1336_s23 }
 0x247   : > { %s1675_s22 = smov %s1678_s25  ;;  %s1676_s23 = smov %s1682_s26 }
 0x248   :  { %14 = sbr.rel (!%p12_p1) target bundleno = 4 (0x4), region = 134 }

</bundles_post_ra>
